<compile_context>
chip_gen: v7x
topology: tpu7x:2x2x1
jax: 0.10.0
libtpu: 0.0.40
codegen_flags: <defaults>
</compile_context>

<pallas_src>
import jax
import jax.numpy as jnp
from jax.experimental import pallas as pl
from jax.experimental.pallas import tpu as pltpu


# ---------------------------------------------------------------------------
# Fused stride-2 3x3 conv kernel (weight resident, 9 MXU matmuls per block)
# ---------------------------------------------------------------------------
def _downsample_conv_kernel(x_main_ref, x_extra_ref, w_ref, b_ref, o_ref):
    # x_main_ref : (Tho,   Wo_p+1, 4*C) bf16  -- space-to-depth rows [i*Tho, (i+1)*Tho)
    # x_extra_ref: (1,     Wo_p+1, 4*C) bf16  -- halo row (i+1)*Tho
    # w_ref      : (9, C, Cout)         bf16  -- VMEM-resident (constant block index)
    # b_ref      : (1, Cout)            f32   -- VMEM-resident
    # o_ref      : (Tho, Wo_p, Cout)    f32
    tho, wo_p, cout = o_ref.shape
    c = w_ref.shape[1]

    # (Tho+1, Wo_p+1, 4C) slab covering the 1-row halo between row blocks.
    slab = jnp.concatenate([x_main_ref[...], x_extra_ref[...]], axis=0)

    m = tho * wo_p
    acc = jnp.zeros((m, cout), jnp.float32)
    for kh in range(3):
        rh, ph = kh >> 1, kh & 1            # row offset / H phase
        for kw in range(3):
            cw, pw = kw >> 1, kw & 1        # col offset / W phase
            phase = ph * 2 + pw
            tap = slab[rh:rh + tho, cw:cw + wo_p, phase * c:(phase + 1) * c]
            acc = acc + jnp.dot(tap.reshape(m, c), w_ref[kh * 3 + kw],
                                preferred_element_type=jnp.float32)

    out = (acc + b_ref[...]).astype(o_ref.dtype)
    o_ref[...] = out.reshape(tho, wo_p, cout)


# ---------------------------------------------------------------------------
# Helpers
# ---------------------------------------------------------------------------
def _round_up(x, m):
    return ((x + m - 1) // m) * m


def _vmem_cap_bytes():
    """Physical VMEM of the local part; conservative v7x fallback."""
    try:
        info = pltpu.get_tpu_info()
        cap = int(getattr(info, "vmem_capacity_bytes", 0) or 0)
        if cap > 0:
            return cap
    except Exception:
        pass
    return 64 * 1024 * 1024


def _choose_tho(B, Ho, Wo_p, C, Cout):
    """Output-row block height: ~256 flattened MXU rows, VMEM-safe, and at
    least 2 parallel grid blocks so both v7x TensorCores get work."""
    tho = max(1, min(Ho, max(1, 256 // max(Wo_p, 1))))

    def live_bytes(t):
        wq = Wo_p + 1
        return (4 * t * wq * 4 * C * 2        # pipelined input bufs + slab temp
                + 3 * t * Wo_p * Cout * 4     # output bufs + f32 accumulator
                + 2 * 9 * C * Cout * 2)       # resident weight

    while tho > 1 and live_bytes(tho) > 24 * 1024 * 1024:
        tho = max(1, tho // 2)
    while tho > 1 and B * ((Ho + tho - 1) // tho) < 2:
        tho = max(1, tho // 2)
    return tho


# ---------------------------------------------------------------------------
# DownSample forward
# ---------------------------------------------------------------------------
def downsample_forward(x_nchw, temb, w, b):
    """DownSample.forward: Conv2d(in_ch, in_ch, 3, stride=2, padding=1)(x)."""
    del temb  # the PyTorch module accepts temb but does not use it
    B, C, H, W = x_nchw.shape
    Cout = w.shape[0]
    Ho, Wo = (H + 1) // 2, (W + 1) // 2
    Wo_p = _round_up(Wo, 8)
    Tho = _choose_tho(B, Ho, Wo_p, C, Cout)
    Ho_p = _round_up(Ho, Tho)
    n_h = Ho_p // Tho
    Wq = Wo_p + 1
    C4 = 4 * C

    # One fused producer: transpose + bf16 cast + zero-pad + 2x2 space-to-depth,
    # so the stride-2 taps become static slices inside the kernel.
    x_nhwc = jnp.transpose(x_nchw, (0, 2, 3, 1)).astype(jnp.bfloat16)
    Hp, Wp = 2 * (Ho_p + 1), 2 * Wq
    x_pad = jnp.pad(x_nhwc, ((0, 0), (1, Hp - 1 - H), (1, Wp - 1 - W), (0, 0)))
    xs = (x_pad.reshape(B, Ho_p + 1, 2, Wq, 2, C)
               .transpose(0, 1, 3, 2, 4, 5)
               .reshape(B, Ho_p + 1, Wq, C4))
    # xs[b, r, q, (ph*2+pw)*C + ci] == x_padded[b, 2r+ph, 2q+pw, ci]

    # K order (kh*3+kw), contraction over ci, matching the kernel's tap order.
    w9 = jnp.transpose(w, (2, 3, 1, 0)).reshape(9, C, Cout).astype(jnp.bfloat16)
    b2 = b.astype(jnp.float32).reshape(1, Cout)

    # Generation-aware VMEM budget (pipelined inputs/outputs + resident weight
    # + in-kernel slab/accumulator temps), clamped to 3/4 of physical VMEM.
    main_b = Tho * Wq * C4 * 2
    extra_b = Wq * C4 * 2
    out_b = Tho * Wo_p * Cout * 4
    w_b = 9 * C * Cout * 2
    live = (2 * (main_b + extra_b + out_b) + 2 * w_b
            + (main_b + extra_b) + out_b + 2 * Tho * Wo_p * C * 2)
    vmem_limit = int(min(max(2 * live, 32 * 1024 * 1024),
                         _vmem_cap_bytes() * 3 // 4))

    cost = pl.CostEstimate(
        flops=2 * B * Ho_p * Wo_p * Cout * 9 * C,
        transcendentals=0,
        bytes_accessed=(B * (Ho_p + 1) * Wq * C4 * 2      # main slab read
                        + B * n_h * Wq * C4 * 2           # halo-row re-reads
                        + w_b + Cout * 4                  # resident weight/bias
                        + B * Ho_p * Wo_p * Cout * 4))    # output write

    y = pl.pallas_call(
        _downsample_conv_kernel,
        out_shape=jax.ShapeDtypeStruct((B, Ho_p, Wo_p, Cout), jnp.float32),
        grid_spec=pltpu.PrefetchScalarGridSpec(
            num_scalar_prefetch=0,
            grid=(B, n_h),
            in_specs=[
                pl.BlockSpec((None, Tho, Wq, C4),
                             lambda bb, i: (bb, i, 0, 0)),
                pl.BlockSpec((None, 1, Wq, C4),
                             lambda bb, i: (bb, (i + 1) * Tho, 0, 0)),
                pl.BlockSpec((9, C, Cout), lambda bb, i: (0, 0, 0)),
                pl.BlockSpec((1, Cout), lambda bb, i: (0, 0)),
            ],
            out_specs=pl.BlockSpec((None, Tho, Wo_p, Cout),
                                   lambda bb, i: (bb, i, 0, 0)),
        ),
        compiler_params=pltpu.CompilerParams(
            dimension_semantics=("parallel", "parallel"),
            vmem_limit_bytes=vmem_limit,
        ),
        cost_estimate=cost,
    )(xs, xs, w9, b2)

    y = y[:, :Ho, :Wo, :]                      # drop alignment padding
    return jnp.transpose(y, (0, 3, 1, 2))      # back to NCHW (PyTorch layout)


# ---------------------------------------------------------------------------
if __name__ == "__main__":
    B, in_ch, H, W, tdim = 2, 64, 16, 16, 32

    key = jax.random.PRNGKey(0)
    k_x, k_t, k_w = jax.random.split(key, 3)
    x = jax.random.normal(k_x, (B, in_ch, H, W), jnp.float32)
    temb = jax.random.normal(k_t, (B, tdim), jnp.float32)   # ignored by forward

    # Conv2d(in_ch, in_ch, 3, stride=2, padding=1): xavier_uniform W, zero bias.
    fan = in_ch * 9
    bound = (6.0 / (fan + fan)) ** 0.5
    w = jax.random.uniform(k_w, (in_ch, in_ch, 3, 3), jnp.float32, -bound, bound)
    b = jnp.zeros((in_ch,), jnp.float32)

    fwd = jax.jit(downsample_forward)
    out = jax.block_until_ready(fwd(x, temb, w, b))

    Ho, Wo = (H + 1) // 2, (W + 1) // 2
    assert out.shape == (B, in_ch, Ho, Wo), out.shape
    assert bool(jnp.all(jnp.isfinite(out)))

    # Cross-check against XLA's conv (f32 reference; the kernel feeds the MXU bf16).
    ref = jax.lax.conv_general_dilated(
        x, w, window_strides=(2, 2), padding=((1, 1), (1, 1)),
        dimension_numbers=("NCHW", "OIHW", "NCHW")) + b[None, :, None, None]
    max_err = float(jnp.max(jnp.abs(out - ref)))
    assert max_err < 0.15, f"max abs err {max_err}"

    print("KERNEL_OK")
</pallas_src>

<mosaic_0001>
module attributes {stable_mosaic.version = 11 : i64} {
  func.func @_downsample_conv_kernel(%arg0: i32, %arg1: i32, %arg2: memref<1x8x9x256xbf16, #tpu.memory_space<vmem>>, %arg3: memref<1x1x9x256xbf16, #tpu.memory_space<vmem>>, %arg4: memref<9x64x64xbf16, #tpu.memory_space<vmem>>, %arg5: memref<1x64xf32, #tpu.memory_space<vmem>>, %arg6: memref<1x8x8x64xf32, #tpu.memory_space<vmem>>) attributes {dimension_semantics = [#tpu.dimension_semantics<parallel>, #tpu.dimension_semantics<parallel>], iteration_bounds = array<i64: 2, 1>, scalar_prefetch = 0 : i64, scratch_operands = 0 : i64, tpu.core_type = #tpu.core_type<tc>, window_params = [{transform_indices = @transform_0, window_bounds = array<i64: 1, 8, 9, 256>}, {transform_indices = @transform_1, window_bounds = array<i64: 1, 1, 9, 256>}, {pipeline_mode = #tpu.pipeline_mode<synchronous>, transform_indices = @transform_2, window_bounds = array<i64: 9, 64, 64>}, {pipeline_mode = #tpu.pipeline_mode<synchronous>, transform_indices = @transform_3, window_bounds = array<i64: 1, 64>}, {transform_indices = @transform_4, window_bounds = array<i64: 1, 8, 8, 64>}]} {
    %c0 = arith.constant 0 : index
    %c0_0 = arith.constant 0 : index
    %c0_1 = arith.constant 0 : index
    %c0_2 = arith.constant 0 : index
    %0 = vector.load %arg2[%c0, %c0_0, %c0_1, %c0_2] : memref<1x8x9x256xbf16, #tpu.memory_space<vmem>>, vector<1x8x9x256xbf16>
    %1 = vector.shape_cast %0 : vector<1x8x9x256xbf16> to vector<8x9x256xbf16>
    %c0_3 = arith.constant 0 : index
    %c0_4 = arith.constant 0 : index
    %c0_5 = arith.constant 0 : index
    %c0_6 = arith.constant 0 : index
    %2 = vector.load %arg3[%c0_3, %c0_4, %c0_5, %c0_6] : memref<1x1x9x256xbf16, #tpu.memory_space<vmem>>, vector<1x1x9x256xbf16>
    %3 = vector.shape_cast %2 : vector<1x1x9x256xbf16> to vector<1x9x256xbf16>
    %4 = tpu.concatenate %1, %3 in 0 : vector<8x9x256xbf16>, vector<1x9x256xbf16> -> vector<9x9x256xbf16>
    %cst = arith.constant 0.000000e+00 : f32
    %5 = vector.broadcast %cst : f32 to vector<64x64xf32>
    %6 = vector.extract_strided_slice %4 {offsets = [0, 0, 0], sizes = [8, 8, 64], strides = [1, 1, 1]} : vector<9x9x256xbf16> to vector<8x8x64xbf16>
    %7 = vector.shape_cast %6 : vector<8x8x64xbf16> to vector<64x64xbf16>
    %c0_7 = arith.constant 0 : index
    %c0_8 = arith.constant 0 : index
    %c0_9 = arith.constant 0 : index
    %8 = vector.load %arg4[%c0_7, %c0_8, %c0_9] : memref<9x64x64xbf16, #tpu.memory_space<vmem>>, vector<1x64x64xbf16>
    %9 = vector.shape_cast %8 : vector<1x64x64xbf16> to vector<64x64xbf16>
    %cst_10 = arith.constant dense<0.000000e+00> : vector<64x64xf32>
    %10 = tpu.matmul %7, %9, %cst_10 {dimension_numbers = #tpu.dot_dimension_numbers<[1], [0], [0], [1], [0, 0, 1, 1], [], []>} : vector<64x64xbf16>, vector<64x64xbf16>, vector<64x64xf32> -> vector<64x64xf32>
    %11 = arith.addf %5, %10 : vector<64x64xf32>
    %12 = vector.extract_strided_slice %4 {offsets = [0, 0, 64], sizes = [8, 8, 64], strides = [1, 1, 1]} : vector<9x9x256xbf16> to vector<8x8x64xbf16>
    %13 = vector.shape_cast %12 : vector<8x8x64xbf16> to vector<64x64xbf16>
    %c1 = arith.constant 1 : index
    %c0_11 = arith.constant 0 : index
    %c0_12 = arith.constant 0 : index
    %14 = vector.load %arg4[%c1, %c0_11, %c0_12] : memref<9x64x64xbf16, #tpu.memory_space<vmem>>, vector<1x64x64xbf16>
    %15 = vector.shape_cast %14 : vector<1x64x64xbf16> to vector<64x64xbf16>
    %cst_13 = arith.constant dense<0.000000e+00> : vector<64x64xf32>
    %16 = tpu.matmul %13, %15, %cst_13 {dimension_numbers = #tpu.dot_dimension_numbers<[1], [0], [0], [1], [0, 0, 1, 1], [], []>} : vector<64x64xbf16>, vector<64x64xbf16>, vector<64x64xf32> -> vector<64x64xf32>
    %17 = arith.addf %11, %16 : vector<64x64xf32>
    %18 = vector.extract_strided_slice %4 {offsets = [0, 1, 0], sizes = [8, 8, 64], strides = [1, 1, 1]} : vector<9x9x256xbf16> to vector<8x8x64xbf16>
    %19 = vector.shape_cast %18 : vector<8x8x64xbf16> to vector<64x64xbf16>
    %c2 = arith.constant 2 : index
    %c0_14 = arith.constant 0 : index
    %c0_15 = arith.constant 0 : index
    %20 = vector.load %arg4[%c2, %c0_14, %c0_15] : memref<9x64x64xbf16, #tpu.memory_space<vmem>>, vector<1x64x64xbf16>
    %21 = vector.shape_cast %20 : vector<1x64x64xbf16> to vector<64x64xbf16>
    %cst_16 = arith.constant dense<0.000000e+00> : vector<64x64xf32>
    %22 = tpu.matmul %19, %21, %cst_16 {dimension_numbers = #tpu.dot_dimension_numbers<[1], [0], [0], [1], [0, 0, 1, 1], [], []>} : vector<64x64xbf16>, vector<64x64xbf16>, vector<64x64xf32> -> vector<64x64xf32>
    %23 = arith.addf %17, %22 : vector<64x64xf32>
    %24 = vector.extract_strided_slice %4 {offsets = [0, 0, 128], sizes = [8, 8, 64], strides = [1, 1, 1]} : vector<9x9x256xbf16> to vector<8x8x64xbf16>
    %25 = vector.shape_cast %24 : vector<8x8x64xbf16> to vector<64x64xbf16>
    %c3 = arith.constant 3 : index
    %c0_17 = arith.constant 0 : index
    %c0_18 = arith.constant 0 : index
    %26 = vector.load %arg4[%c3, %c0_17, %c0_18] : memref<9x64x64xbf16, #tpu.memory_space<vmem>>, vector<1x64x64xbf16>
    %27 = vector.shape_cast %26 : vector<1x64x64xbf16> to vector<64x64xbf16>
    %cst_19 = arith.constant dense<0.000000e+00> : vector<64x64xf32>
    %28 = tpu.matmul %25, %27, %cst_19 {dimension_numbers = #tpu.dot_dimension_numbers<[1], [0], [0], [1], [0, 0, 1, 1], [], []>} : vector<64x64xbf16>, vector<64x64xbf16>, vector<64x64xf32> -> vector<64x64xf32>
    %29 = arith.addf %23, %28 : vector<64x64xf32>
    %30 = vector.extract_strided_slice %4 {offsets = [0, 0, 192], sizes = [8, 8, 64], strides = [1, 1, 1]} : vector<9x9x256xbf16> to vector<8x8x64xbf16>
    %31 = vector.shape_cast %30 : vector<8x8x64xbf16> to vector<64x64xbf16>
    %c4 = arith.constant 4 : index
    %c0_20 = arith.constant 0 : index
    %c0_21 = arith.constant 0 : index
    %32 = vector.load %arg4[%c4, %c0_20, %c0_21] : memref<9x64x64xbf16, #tpu.memory_space<vmem>>, vector<1x64x64xbf16>
    %33 = vector.shape_cast %32 : vector<1x64x64xbf16> to vector<64x64xbf16>
    %cst_22 = arith.constant dense<0.000000e+00> : vector<64x64xf32>
    %34 = tpu.matmul %31, %33, %cst_22 {dimension_numbers = #tpu.dot_dimension_numbers<[1], [0], [0], [1], [0, 0, 1, 1], [], []>} : vector<64x64xbf16>, vector<64x64xbf16>, vector<64x64xf32> -> vector<64x64xf32>
    %35 = arith.addf %29, %34 : vector<64x64xf32>
    %36 = vector.extract_strided_slice %4 {offsets = [0, 1, 128], sizes = [8, 8, 64], strides = [1, 1, 1]} : vector<9x9x256xbf16> to vector<8x8x64xbf16>
    %37 = vector.shape_cast %36 : vector<8x8x64xbf16> to vector<64x64xbf16>
    %c5 = arith.constant 5 : index
    %c0_23 = arith.constant 0 : index
    %c0_24 = arith.constant 0 : index
    %38 = vector.load %arg4[%c5, %c0_23, %c0_24] : memref<9x64x64xbf16, #tpu.memory_space<vmem>>, vector<1x64x64xbf16>
    %39 = vector.shape_cast %38 : vector<1x64x64xbf16> to vector<64x64xbf16>
    %cst_25 = arith.constant dense<0.000000e+00> : vector<64x64xf32>
    %40 = tpu.matmul %37, %39, %cst_25 {dimension_numbers = #tpu.dot_dimension_numbers<[1], [0], [0], [1], [0, 0, 1, 1], [], []>} : vector<64x64xbf16>, vector<64x64xbf16>, vector<64x64xf32> -> vector<64x64xf32>
    %41 = arith.addf %35, %40 : vector<64x64xf32>
    %42 = vector.extract_strided_slice %4 {offsets = [1, 0, 0], sizes = [8, 8, 64], strides = [1, 1, 1]} : vector<9x9x256xbf16> to vector<8x8x64xbf16>
    %43 = vector.shape_cast %42 : vector<8x8x64xbf16> to vector<64x64xbf16>
    %c6 = arith.constant 6 : index
    %c0_26 = arith.constant 0 : index
    %c0_27 = arith.constant 0 : index
    %44 = vector.load %arg4[%c6, %c0_26, %c0_27] : memref<9x64x64xbf16, #tpu.memory_space<vmem>>, vector<1x64x64xbf16>
    %45 = vector.shape_cast %44 : vector<1x64x64xbf16> to vector<64x64xbf16>
    %cst_28 = arith.constant dense<0.000000e+00> : vector<64x64xf32>
    %46 = tpu.matmul %43, %45, %cst_28 {dimension_numbers = #tpu.dot_dimension_numbers<[1], [0], [0], [1], [0, 0, 1, 1], [], []>} : vector<64x64xbf16>, vector<64x64xbf16>, vector<64x64xf32> -> vector<64x64xf32>
    %47 = arith.addf %41, %46 : vector<64x64xf32>
    %48 = vector.extract_strided_slice %4 {offsets = [1, 0, 64], sizes = [8, 8, 64], strides = [1, 1, 1]} : vector<9x9x256xbf16> to vector<8x8x64xbf16>
    %49 = vector.shape_cast %48 : vector<8x8x64xbf16> to vector<64x64xbf16>
    %c7 = arith.constant 7 : index
    %c0_29 = arith.constant 0 : index
    %c0_30 = arith.constant 0 : index
    %50 = vector.load %arg4[%c7, %c0_29, %c0_30] : memref<9x64x64xbf16, #tpu.memory_space<vmem>>, vector<1x64x64xbf16>
    %51 = vector.shape_cast %50 : vector<1x64x64xbf16> to vector<64x64xbf16>
    %cst_31 = arith.constant dense<0.000000e+00> : vector<64x64xf32>
    %52 = tpu.matmul %49, %51, %cst_31 {dimension_numbers = #tpu.dot_dimension_numbers<[1], [0], [0], [1], [0, 0, 1, 1], [], []>} : vector<64x64xbf16>, vector<64x64xbf16>, vector<64x64xf32> -> vector<64x64xf32>
    %53 = arith.addf %47, %52 : vector<64x64xf32>
    %54 = vector.extract_strided_slice %4 {offsets = [1, 1, 0], sizes = [8, 8, 64], strides = [1, 1, 1]} : vector<9x9x256xbf16> to vector<8x8x64xbf16>
    %55 = vector.shape_cast %54 : vector<8x8x64xbf16> to vector<64x64xbf16>
    %c8 = arith.constant 8 : index
    %c0_32 = arith.constant 0 : index
    %c0_33 = arith.constant 0 : index
    %56 = vector.load %arg4[%c8, %c0_32, %c0_33] : memref<9x64x64xbf16, #tpu.memory_space<vmem>>, vector<1x64x64xbf16>
    %57 = vector.shape_cast %56 : vector<1x64x64xbf16> to vector<64x64xbf16>
    %cst_34 = arith.constant dense<0.000000e+00> : vector<64x64xf32>
    %58 = tpu.matmul %55, %57, %cst_34 {dimension_numbers = #tpu.dot_dimension_numbers<[1], [0], [0], [1], [0, 0, 1, 1], [], []>} : vector<64x64xbf16>, vector<64x64xbf16>, vector<64x64xf32> -> vector<64x64xf32>
    %59 = arith.addf %53, %58 : vector<64x64xf32>
    %c0_35 = arith.constant 0 : index
    %c0_36 = arith.constant 0 : index
    %60 = vector.load %arg5[%c0_35, %c0_36] : memref<1x64xf32, #tpu.memory_space<vmem>>, vector<1x64xf32>
    %61 = vector.broadcast %60 : vector<1x64xf32> to vector<64x64xf32>
    %62 = arith.addf %59, %61 : vector<64x64xf32>
    %63 = vector.shape_cast %62 : vector<64x64xf32> to vector<8x8x64xf32>
    %c0_37 = arith.constant 0 : index
    %c0_38 = arith.constant 0 : index
    %c0_39 = arith.constant 0 : index
    %c0_40 = arith.constant 0 : index
    %64 = vector.load %arg6[%c0_37, %c0_38, %c0_39, %c0_40] : memref<1x8x8x64xf32, #tpu.memory_space<vmem>>, vector<1x8x8x64xf32>
    %65 = vector.shape_cast %64 : vector<1x8x8x64xf32> to vector<8x8x64xf32>
    %66 = vector.shape_cast %63 : vector<8x8x64xf32> to vector<1x8x8x64xf32>
    tpu.vector_store %arg6[%c0_37, %c0_38, %c0_39, %c0_40], %66 {strides = array<i32>} : memref<1x8x8x64xf32, #tpu.memory_space<vmem>>, vector<1x8x8x64xf32>,
    return
  }
  func.func @transform_0(%arg0: i32, %arg1: i32) -> (i32, i32, i32, i32) {
    %c0_i32 = arith.constant 0 : i32
    %c0_i32_0 = arith.constant 0 : i32
    %c0_i32_1 = arith.constant 0 : i32
    return %arg0, %arg1, %c0_i32, %c0_i32_0 : i32, i32, i32, i32
  }
  func.func @transform_1(%arg0: i32, %arg1: i32) -> (i32, i32, i32, i32) {
    %c1_i32 = arith.constant 1 : i32
    %0 = arith.addi %arg1, %c1_i32 : i32
    %c8_i32 = arith.constant 8 : i32
    %1 = arith.muli %0, %c8_i32 : i32
    %c0_i32 = arith.constant 0 : i32
    %c0_i32_0 = arith.constant 0 : i32
    %c0_i32_1 = arith.constant 0 : i32
    return %arg0, %1, %c0_i32, %c0_i32_0 : i32, i32, i32, i32
  }
  func.func @transform_2(%arg0: i32, %arg1: i32) -> (i32, i32, i32) {
    %c0_i32 = arith.constant 0 : i32
    %c0_i32_0 = arith.constant 0 : i32
    %c0_i32_1 = arith.constant 0 : i32
    %c0_i32_2 = arith.constant 0 : i32
    return %c0_i32, %c0_i32_0, %c0_i32_1 : i32, i32, i32
  }
  func.func @transform_3(%arg0: i32, %arg1: i32) -> (i32, i32) {
    %c0_i32 = arith.constant 0 : i32
    %c0_i32_0 = arith.constant 0 : i32
    %c0_i32_1 = arith.constant 0 : i32
    return %c0_i32, %c0_i32_0 : i32, i32
  }
  func.func @transform_4(%arg0: i32, %arg1: i32) -> (i32, i32, i32, i32) {
    %c0_i32 = arith.constant 0 : i32
    %c0_i32_0 = arith.constant 0 : i32
    %c0_i32_1 = arith.constant 0 : i32
    return %arg0, %arg1, %c0_i32, %c0_i32_0 : i32, i32, i32, i32
  }
}

</mosaic_0001>

<bundles_post_ra>
// kernel: downsample_forward.1
= control target key start
LH: loop header
LB: loop body
LE: loop exit
PB: predicated region body
PF: predicated region fallthrough
CT: control target
= control target key end

     0   :  { %9 = vsyncpa [#allocation3], 0  ;;  %s3006_s0 = inlined_call_operand.vmem [shape: bf16[2,9,9,256], index: 0, kind: input, shape index: {}, may-alias: {0,1}]   ;;  %s3007_s1 = inlined_call_operand.vmem [shape: bf16[2,9,9,256], index: 1, kind: input, shape index: {}, may-alias: {0,1}]   ;;  %s3008_s2 = inlined_call_operand.vmem [shape: bf16[9,64,64], index: 2, kind: input, shape index: {}]   ;;  %s3009_s3 = inlined_call_operand.vmem [shape: f32[1,64], index: 3, kind: input, shape index: {}]   ;;  %s3010_s4 = inlined_call_operand.hbm [shape: f32[2,8,8,64], index: 4, kind: output, shape index: {}]  }
   0x1   :  { %11 = vsyncpa [#allocation3 + $0x1], 0  ;;  %s2461_s15 = smov 0   ;;  %s2463_s16 = smov 0  }
   0x2   :  { %s2465_s17 = smov 0   ;;  %s2467_s18 = smov 0  }
   0x3   :  { %s2469_s19 = smov 0   ;;  %s2471_s20 = smov 0  }
   0x4 LB: > { %s1779_s21 = sadd.s32 4294967295, %s2430_s20   ;;  %s1780_s22 = sadd.s32 4294967294, %s2430_s20   ;;  %s2430_s20 = sphi %s2471_s20, %s17_s20   ;;  %s2426_s19 = sphi %s2469_s19, %s3019_s19   ;;  %s2422_s18 = sphi %s2467_s18, %s3018_s18   ;;  %s2418_s17 = sphi %s2465_s17, %s3017_s17   ;;  %s2414_s16 = sphi %s2463_s16, %s3016_s16   ;;  %s2410_s15 = sphi %s2461_s15, %s3015_s15  }
   0x5   : > { %s29_s23 = sadd.s32 1, %s2426_s19  ;;  %s140_s24 = sadd.s32 1, %s2418_s17 }
   0x6   : > { %p31_p0 = scmp.ge.s32.totalorder %s29_s23, 2  ;;  %p150_p1 = scmp.ne.s32.totalorder %s2418_s17, %s2414_s16 }
   0x7   : > { %p151_p2 = scmp.eq.s32.totalorder %s1779_s21, 1  ;;  %p156_p3 = scmp.ne.s32.totalorder %s2414_s16, %s2410_s15 }
   0x8   : > { %s3021_s23 = smov (%p31_p0, %s29_s23), 0  ;;  %p157_p5 = scmp.eq.s32.totalorder %s1780_s22, 1 }
   0x9   : > { %p2501_p4 = por %p151_p2, %p150_p1  ;;  %s135_s26 = ssub.s32 %s2426_s19, %s3021_s23 }
   0xa   : > { %p1783_p6 = scmp.ge.s32.totalorder %s2430_s20, 1  ;;  %p138_p7 = scmp.eq.s32.totalorder %s135_s26, 0 }
   0xb   : > { %p2508_p8 = por %p157_p5, %p156_p3  ;;  %p223_p9 = scmp.lt.s32.totalorder %s2430_s20, 3 }
   0xc   : > { %s2514_s28 = scalar_select %p138_p7, %s2418_s17, %s140_s24  }
   0xd   : > { %p224_p10 = pnand %p1783_p6, %p223_p9 }
   0xe   : > { %p278_p11 = scmp.lt.s32.totalorder (!%p224_p10), %s2422_s18, 1  ;;  %v2316_v0 = vld [vmem:[%s3008_s2 + $0x20] sm:$0xff] (!%p224_p10)   ;;  %v2318_v2 = vld [vmem:[%s3008_s2 + $0x28] sm:$0xff] (!%p224_p10)   ;;  %v2320_v4 = vld [vmem:[%s3008_s2 + $0x30] sm:$0xff] (!%p224_p10)   ;;  %s2432_s26 = smov (!%p224_p10), 64   ;;  %vm396_vm3 = vcmask (!%p224_p10), 523264  }
   0xf   : > { %227 = sbr.rel (%p224_p10) target bundleno = 455 (0x1c7), region = 36  ;;  %v2317_v1 = vld [vmem:[%s3008_s2 + $0x80] sm:$0xff] (!%p224_p10)   ;;  %2032 = vmatprep.subr.bf16.mxu1 (!%p224_p10), %v2316_v0  ;;  %v2319_v3 = vld [vmem:[%s3008_s2 + $0x88] sm:$0xff] (!%p224_p10)   ;;  %v2321_v25 = vld [vmem:[%s3008_s2 + $0x90] sm:$0xff] (!%p224_p10)   ;;  %vm575_vm0 = vsmask.f32 (!%p224_p10), 3328 }
  0x10   : > { %2096 = vmatprep.subr.bf16.mxu0 (!%p224_p10), %v2317_v1  ;;  %2033 = vmatpush3.bf16.msra.mxu1 (!%p224_p10), %v2316_v0  ;;  %v2322_v29 = vld [vmem:[%s3008_s2 + $0x38] sm:$0xff] (!%p224_p10)   ;;  %vm576_vm1 = vsmask.f32 (!%p224_p10), 7440  ;;  %v2621_v48 = vld [vmem:[%s3008_s2] sm:$0xff] (!%p224_p10)   ;;  %s268_s5 = sand.u32 (!%p224_p10), 1, %s2414_s16   ;;  %s1959_s9 = sshll.u32 (!%p224_p10), %s2422_s18, 10 }
  0x11   : > { %2097 = vmatpush3.bf16.msra.mxu0 (!%p224_p10), %v2317_v1  ;;  %2034 = vmatprep.subr.bf16.mxu1 (!%p224_p10), %v2318_v2  ;;  %v2323_v30 = vld [vmem:[%s3008_s2 + $0x98] sm:$0xff] (!%p224_p10)   ;;  %v2627_v50 = vld [vmem:[%s3008_s2 + $0xa0] sm:$0xff] (!%p224_p10)   ;;  %vm2657_vm2 = vmor (!%p224_p10), %vm575_vm0, %vm576_vm1  ;;  %s1784_s6 = sshll.u32 (!%p224_p10), %s268_s5, 6  ;;  %s2949_s13 = scalar_lea.hbm (!%p224_p10), %s3010_s4, %s1959_s9 }
  0x12   : > { %2098 = vmatprep.subr.bf16.mxu0 (!%p224_p10), %v2319_v3  ;;  %s270_s10 = scalar_lea.vmem (!%p224_p10), [#allocation2], %s1784_s6  ;;  %s2960_s14 = scalar_lea.sflag (!%p224_p10), [#allocation3], %s268_s5 }
  0x13   : > { %s1676_s11 = sshll.u32 (!%p224_p10), %s270_s10, 4  ;;  %s2433_s24 = smov (!%p224_p10), [#allocation2]   ;;  %s2951_s11 = int_to_ptr.vmem [resolvable:$true] %s1676_s11 }
  0x14   : > { %2035 = vmatpush3.bf16.msra.mxu1 (!%p224_p10), %v2318_v2  ;;  %s2352_s22 = scalar_lea.vmem (!%p224_p10), %s2951_s11, 1024 }
  0x15   : > { %2099 = vmatpush3.bf16.msra.mxu0 (!%p224_p10), %v2319_v3  ;;  %2036 = vmatprep.subr.bf16.mxu1 (!%p224_p10), %v2320_v4  ;;  %p2353_p12 = scmp.ne.s32.totalorder (!%p224_p10), %s2951_s11, %s2352_s22 }
  0x16   : > { %s2518_s29 = scalar_select %p278_p11, %s2422_s18, 1  ;;  %2100 = vmatprep.subr.bf16.mxu0 %v2321_v25 }
  0x17   : > { %p2354_p13 = pnand %p2353_p12, %p2501_p4 }
  0x18   : > { %s2248_s8 = smul.u32 144, %s2518_s29  ;;  %2037 = vmatpush3.bf16.msra.mxu1 %v2320_v4 }
  0x19   : > { %2101 = vmatpush3.bf16.msra.mxu0 %v2321_v25  ;;  %2038 = vmatprep.subr.bf16.mxu1 %v2322_v29  ;;  %p2355_p0 = pneg %p2354_p13 }
  0x1a   : > { %s2536_s21 = scalar_lea.vmem %s3006_s0, %s2248_s8  ;;  %s1958_s29 = sadd.s32 128, %s2248_s8  ;;  %2102 = vmatprep.subr.bf16.mxu0 %v2323_v30 }
  0x1b   : > { %v2542_v5 = vld [vmem:[%s2536_s21 + $0x20] sm:$0xff]  ;;  %v2554_v9 = vld [vmem:[%s2536_s21 + $0x30] sm:$0xff]  ;;  %s304_s8 = scalar_lea.vmem %s3007_s1, %s1958_s29 }
  0x1c   : > { %v2545_v6 = vld [vmem:[%s2536_s21] sm:$0xff]  ;;  %962 = vrot.lane.b32.xlu1 %v2542_v5, %s2432_s26  ;;  %v607_v7 = vshrl.u32 %v2542_v5, 16  ;;  %v610_v8 = vshll.u32 %v2542_v5, 16  ;;  %v621_v10 = vshrl.u32 %v2554_v9, 16  ;;  %v624_v11 = vshll.u32 %v2554_v9, 16  ;;  %v2559_v12 = vld [vmem:[%s2536_s21 + $0x10] sm:$0xff]  ;;  %2039 = vmatpush3.bf16.msra.mxu1 %v2322_v29 }
  0x1d   : > { %958 = vrot.lane.b32.xlu0 %v2545_v6, %s2432_s26  ;;  %v579_v15 = vshrl.u32 %v2545_v6, 16  ;;  %v582_v16 = vshll.u32 %v2545_v6, 16  ;;  %v593_v19 = vshrl.u32 %v2559_v12, 16  ;;  %v596_v20 = vshll.u32 %v2559_v12, 16  ;;  %v2566_v21 = vld [vmem:[%s2536_s21 + $0x50] sm:$0xff]  ;;  %v2585_v28 = vld [vmem:[%s2536_s21 + $0x40] sm:$0xff]  ;;  %2103 = vmatpush3.bf16.msra.mxu0 %v2323_v30 }
  0x1e   : > { %v609_v13 = vrot.slane %v607_v7, 4  ;;  %v612_v14 = vrot.slane %v610_v8, 5  ;;  %v623_v17 = vrot.slane %v621_v10, 4  ;;  %v626_v18 = vrot.slane %v624_v11, 5  ;;  %v2597_v33 = vld [vmem:[%s2536_s21 + $0x70] sm:$0xff]  ;;  %v2600_v34 = vld [vmem:[%s2536_s21 + $0x60] sm:$0xff]  ;;  %2048 = vmatprep.subr.bf16.mxu1 %v2621_v48  ;;  %2112 = vmatprep.subr.bf16.mxu0 %v2627_v50 }
  0x1f   : > { %v2574_v23 = vcombine.low %v2542_v5, %v2554_v9  ;;  %v2578_v24 = vcombine.low %v2545_v6, %v2559_v12  ;;  %v649_v27 = vshrl.u32 %v2566_v21, 16  ;;  %v581_v31 = vrot.slane %v579_v15, 4  ;;  %v326_v39 = vld [vmem:[%s304_s8 + $0x8] sm:$0x11]  ;;  %v2613_v44 = vld [vmem:[%s304_s8] sm:$0xff] }
  0x20   : > { %v613_v22 = vor.u32 %v612_v14, %v609_v13  ;;  %964 = vrot.lane.b32.xlu1 %v2554_v9, %s2432_s26  ;;  %v627_v26 = vor.u32 %v626_v18, %v623_v17  ;;  %v584_v32 = vrot.slane %v582_v16, 5  ;;  %v595_v36 = vrot.slane %v593_v19, 4  ;;  %v310_v11 = vld [vmem:[%s2536_s21 + $0x8] sm:$0x11]  ;;  %v312_v13 = vld [vmem:[%s2536_s21 + $0x18] sm:$0x11] }
  0x21   : > { %960 = vrot.lane.b32.xlu0 %v2559_v12, %s2432_s26  ;;  %v598_v37 = vrot.slane %v596_v20, 5  ;;  %v652_v38 = vshll.u32 %v2566_v21, 16  ;;  %v651_v41 = vrot.slane %v649_v27, 4  ;;  %v635_v42 = vshrl.u32 %v2585_v28, 16  ;;  %v316_v27 = vld [vmem:[%s2536_s21 + $0x38] sm:$0x11] }
  0x22   : > { %v2602_v35 = vrot.slane %v613_v22, 4  ;;  %v2605_v40 = vrot.slane %v627_v26, 4  ;;  %v638_v43 = vshll.u32 %v2585_v28, 16  ;;  %v677_v45 = vshrl.u32 %v2597_v33, 16  ;;  %v314_v26 = vld [vmem:[%s2536_s21 + $0x28] sm:$0x11] }
  0x23   : > { %v680_v46 = vshll.u32 %v2597_v33, 16  ;;  %v663_v47 = vshrl.u32 %v2600_v34, 16  ;;  %v666_v49 = vshll.u32 %v2600_v34, 16  ;;  %v654_v51 = vrot.slane %v652_v38, 5 }
  0x24   : > { %366 = vrot.lane.b32.xlu1 %v2574_v23, %s2432_s26  ;;  %v1501_v52 = vshrl.u32 %v2613_v44, 16  ;;  %v637_v53 = vrot.slane %v635_v42, 4  ;;  %v640_v54 = vrot.slane %v638_v43, 5  ;;  %v1504_v55 = vshll.u32 %v2613_v44, 16 }
  0x25   : > { %364 = vrot.lane.b32.xlu0 %v2578_v24, %s2432_s26  ;;  %v1510_v56 = vshll.u32 %v326_v39, 16  ;;  %v585_v57 = vor.u32 %v584_v32, %v581_v31  ;;  %v679_v58 = vrot.slane %v677_v45, 4  ;;  %v665_v60 = vrot.slane %v663_v47, 4 }
  0x26   : > { %v1503_v59 = vrot.slane %v1501_v52, 4  ;;  %v668_v61 = vrot.slane %v666_v49, 5  ;;  %v1506_v62 = vrot.slane %v1504_v55, 5  ;;  %v599_v63 = vor.u32 %v598_v37, %v595_v36  ;;  %v320_v55 = vld [vmem:[%s2536_s21 + $0x58] sm:$0x11] }
  0x27   : > { %v2639_v0 = vcombine.low %v2585_v28, %v2566_v21  ;;  %v2647_v1 = vcombine.low %v2600_v34, %v2597_v33  ;;  %v2649_v3 = vrot.slane %v1510_v56, 5  ;;  %v641_v4 = vor.u32 %v640_v54, %v637_v53  ;;  %v318_v54 = vld [vmem:[%s2536_s21 + $0x48] sm:$0x11] }
  0x28   : > { %968 = vrot.lane.b32.xlu1 %v2566_v21, %s2432_s26  ;;  %v1507_v2 = vor.u32 %v1506_v62, %v1503_v59  ;;  %v682_v7 = vrot.slane %v680_v46, 5  ;;  %v586_v8 = vrot.slane %v585_v57, 4  ;;  %v600_v14 = vrot.slane %v599_v63, 4 }
  0x29   : > { %966 = vrot.lane.b32.xlu0 %v2585_v28, %s2432_s26  ;;  %v655_v15 = vor.u32 %v654_v51, %v651_v41  ;;  %v669_v16 = vor.u32 %v668_v61, %v665_v60  ;;  %v588_v18 = vshll.u32 %v310_v11, 16  ;;  %v602_v19 = vshll.u32 %v312_v13, 16  ;;  %v322_v60 = vld [vmem:[%s2536_s21 + $0x68] sm:$0x11]  ;;  %v324_v61 = vld [vmem:[%s2536_s21 + $0x78] sm:$0x11] }
  0x2a   : > { %v2651_v10 = vrot.slane %v1507_v2, 4  ;;  %v2667_v20 = vcombine.low %v2559_v12, %v2542_v5  ;;  %v2671_v22 = vcombine.low %v2554_v9, %v2585_v28  ;;  %v642_v29 = vrot.slane %v641_v4, 4  ;;  %s2356_s21 = sshll.u32 %s2433_s24, 4  ;;  %s2357_s21 = int_to_ptr.vmem [resolvable:$false] %s2356_s21 }
  0x2b   : > { %v590_v30 = vrot.slane %v588_v18, 5  ;;  %v604_v31 = vrot.slane %v602_v19, 5  ;;  %v616_v32 = vshll.u32 %v314_v26, 16  ;;  %v630_v36 = vshll.u32 %v316_v27, 16  ;;  %p2359_p1 = scmp.lt.s32.totalorder %s2951_s11, %s2357_s21 }
  0x2c   : > { %972 = vrot.lane.b32.xlu1 %v2597_v33, %s2432_s26  ;;  %v1513_v25 = vsel %vm2657_vm2, %v2651_v10, %v2649_v3  ;;  %v656_v37 = vrot.slane %v655_v15, 4  ;;  %v670_v38 = vrot.slane %v669_v16, 4  ;;  %v683_v39 = vor.u32 %v682_v7, %v679_v58 }
  0x2d   : > { %970 = vrot.lane.b32.xlu0 %v2600_v34, %s2432_s26  ;;  %v2681_v41 = vsel %vm2657_vm2, %v586_v8, %v590_v30  ;;  %v2685_v42 = vsel %vm2657_vm2, %v600_v14, %v604_v31  ;;  %v618_v43 = vrot.slane %v616_v32, 5  ;;  %v632_v45 = vrot.slane %v630_v36, 5 }
  0x2e   : > { %v2693_v46 = vcombine.low %v2566_v21, %v2600_v34  ;;  %v2697_v47 = vcombine.low %v2597_v33, %v2613_v44  ;;  %v1112_v49 = vrot.slane %v2681_v41, 4  ;;  %v1113_v51 = vrot.slane %v2685_v42, 4 }
  0x2f   : > { %v2704_v52 = vsel %vm2657_vm2, %v2602_v35, %v618_v43  ;;  %v2709_v53 = vsel %vm2657_vm2, %v2605_v40, %v632_v45  ;;  %v644_v58 = vshll.u32 %v318_v54, 16  ;;  %v658_v59 = vshll.u32 %v320_v55, 16 }
  0x30   : > { %370 = vrot.lane.b32.xlu1 %v2647_v1, %s2432_s26  ;;  %v2713_v56 = vcombine.low %v1112_v49, %v1113_v51  ;;  %v1114_v44 = vrot.slane %v2704_v52, 4  ;;  %v1115_v57 = vrot.slane %v2709_v53, 4  ;;  %v684_v62 = vrot.slane %v683_v39, 4 }
  0x31   : > { %368 = vrot.lane.b32.xlu0 %v2639_v0, %s2432_s26  ;;  %v646_v40 = vrot.slane %v644_v58, 5  ;;  %v672_v63 = vshll.u32 %v322_v60, 16  ;;  %v686_v2 = vshll.u32 %v324_v61, 16  ;;  %v660_v3 = vrot.slane %v658_v59, 5 }
  0x32   : > { %v2723_v35 = vcombine.low %v1114_v44, %v1115_v57  ;;  %v1823_v4 = vcombine.low %v2681_v41, %v2685_v42  ;;  %v1824_v11 = vcombine.low %v2704_v52, %v2709_v53  ;;  %v822_v17 = vrot.slane %v2542_v5, 4  ;;  %v2345_v41 = vld [vmem:[%s3008_s2 + $0xf0] sm:$0xff]  }
  0x33   : > { %v2729_v7 = vsel %vm2657_vm2, %v642_v29, %v646_v40  ;;  %v674_v8 = vrot.slane %v672_v63, 5  ;;  %v688_v10 = vrot.slane %v686_v2, 5  ;;  %v2735_v13 = vsel %vm2657_vm2, %v656_v37, %v660_v3  ;;  %v2326_v40 = vld [vmem:[%s3008_s2 + $0x8] sm:$0xff]  }
  0x34   : > { %1385 = vrot.lane.b32.xlu1 %v2671_v22, %s2432_s26  ;;  %v1116_v14 = vrot.slane %v2729_v7, 4  ;;  %v1940_v15 = vcombine.low %v2709_v53, %v2729_v7  ;;  %v1117_v16 = vrot.slane %v2735_v13, 4  ;;  %v1825_v32 = vcombine.low %v2729_v7, %v2735_v13  ;;  %v2327_v63 = vld [vmem:[%s3008_s2 + $0xa8] sm:$0xff]  }
  0x35   : > { %1383 = vrot.lane.b32.xlu0 %v2667_v20, %s2432_s26  ;;  %v2743_v18 = vsel %vm2657_vm2, %v670_v38, %v674_v8  ;;  %v2747_v19 = vsel %vm2657_vm2, %v684_v62, %v688_v10  ;;  %v823_v37 = vrot.slane %v2554_v9, 4  ;;  %v820_v38 = vrot.slane %v2545_v6, 4  ;;  %v2328_v8 = vld [vmem:[%s3008_s2 + $0x10] sm:$0xff]  }
  0x36   : > { %v1118_v26 = vrot.slane %v2743_v18, 4  ;;  %v1119_v27 = vrot.slane %v2747_v19, 4  ;;  %v2752_v29 = vcombine.low %v2747_v19, %v1513_v25  ;;  %v2754_v30 = vcombine.low %v1116_v14, %v1117_v16  ;;  %v2329_v10 = vld [vmem:[%s3008_s2 + $0xb0] sm:$0xff]  }
  0x37   : > { %v1826_v36 = vcombine.low %v2743_v18, %v2747_v19  ;;  %v821_v39 = vrot.slane %v2559_v12, 4  ;;  %v2768_v43 = vcombine.low %v822_v17, %v823_v37  ;;  %v824_v45 = vrot.slane %v2585_v28, 4  ;;  %v2331_v17 = vld [vmem:[%s3008_s2 + $0xb8] sm:$0xff]   ;;  %v2349_v19 = vld [vmem:[%s3008_s2 + $0x108] sm:$0xff]  }
  0x38   : > { %1389 = vrot.lane.b32.xlu1 %v2697_v47, %s2432_s26  ;;  %v2756_v31 = vcombine.low %v1118_v26, %v1119_v27  ;;  %v825_v49 = vrot.slane %v2566_v21, 4  ;;  %v826_v51 = vrot.slane %v2600_v34, 4  ;;  %v827_v54 = vrot.slane %v2597_v33, 4 }
  0x39   : > { %1387 = vrot.lane.b32.xlu0 %v2693_v46, %s2432_s26  ;;  %v2766_v25 = vcombine.low %v820_v38, %v821_v39  ;;  %v1939_v6 = vcombine.low %v2685_v42, %v2704_v52  ;;  %v1941_v9 = vcombine.low %v2735_v13, %v2743_v18  ;;  %s2358_s26 = scalar_lea.vmem %s2357_s21, 2048 }
  0x3a   : > { %v2774_v55 = vcombine.low %v824_v45, %v825_v49  ;;  %v2776_v5 = vcombine.low %v826_v51, %v827_v54  ;;  %v2332_v51 = vld [vmem:[%s3008_s2 + $0x40] sm:$0xff]   ;;  %p2360_p2 = scmp.lt.s32.totalorder %s2358_s26, %s2352_s22 }
  0x3b   : > { %v2333_v54 = vld [vmem:[%s3008_s2 + $0xc0] sm:$0xff]  }
  0x3c   : > { %p2361_p3 = por %p2360_p2, %p2359_p1 }
  0x3e   : > { %p2362_p5 = pnand %p2361_p3, %p2355_p0 }
  0x8e   : > { %v963_v12 = vpop.permute.xlu1 %962 }
  0x8f   : > { %v959_v44 = vpop.permute.xlu0 %958  ;;  %v976_v58 = vrot.slane %v963_v12, 4  ;;  %v2335_v12 = vld [vmem:[%s3008_s2 + $0xc8] sm:$0xff]  }
  0x90   : > { %v974_v21 = vrot.slane %v959_v44, 4  ;;  %v2334_v44 = vld [vmem:[%s3008_s2 + $0x48] sm:$0xff]  }
  0x92   : > { %v965_v57 = vpop.permute.xlu1 %964 }
  0x93   : > { %v961_v28 = vpop.permute.xlu0 %960  ;;  %v977_v59 = vrot.slane %v965_v57, 4 }
  0x94   : > { %v975_v34 = vrot.slane %v961_v28, 4 }
  0x95   : > { %v1864_v33 = vcombine.low %v976_v58, %v977_v59 }
  0x96   : > { %v1863_v60 = vcombine.low %v974_v21, %v975_v34  ;;  %v367_v61 = vpop.permute.xlu1 %366  ;;  %v1951_v34 = vld [vmem:[%s3009_s3] ss:$0 sm:$0xff] }
  0x97   : > { %v365_v62 = vpop.permute.xlu0 %364 }
  0x98   : > { %2040 = vmatprep.mubr.msk.bf16.mxu1 %vm396_vm3, %v365_v62  ;;  %2104 = vmatprep.mubr.msk.bf16.mxu0 %vm396_vm3, %v1863_v60 }
  0x99   : > { %2041 = vmatmul.mubr.msk.bf16.vlgmr.msra.gmra.mrb[0].mxu1 %vm396_vm3, %v367_v61  ;;  %2105 = vmatmul.mubr.msk.bf16.vlgmr.msra.gmra.mrb[0].mxu0 %vm396_vm3, %v1864_v33 }
  0x9a   : > { %2049 = vmatpush3.bf16.msra.mxu1 %v2621_v48  ;;  %2113 = vmatpush3.bf16.msra.mxu0 %v2627_v50  ;;  %v969_v2 = vpop.permute.xlu1 %968  ;;  %v2330_v50 = vld [vmem:[%s3008_s2 + $0x18] sm:$0xff]  }
  0x9b   : > { %v967_v3 = vpop.permute.xlu0 %966  ;;  %2050 = vmatprep.subr.bf16.mxu1 %v2326_v40  ;;  %2114 = vmatprep.subr.bf16.mxu0 %v2327_v63  ;;  %v979_v14 = vrot.slane %v969_v2, 4 }
  0x9c   : > { %v978_v16 = vrot.slane %v967_v3, 4 }
  0x9e   : > { %v1865_v26 = vcombine.low %v978_v16, %v979_v14  ;;  %2051 = vmatpush3.bf16.msra.mxu1 %v2326_v40  ;;  %2115 = vmatpush3.bf16.msra.mxu0 %v2327_v63  ;;  %v973_v48 = vpop.permute.xlu1 %972 }
  0x9f   : > { %v971_v27 = vpop.permute.xlu0 %970  ;;  %2052 = vmatprep.subr.bf16.mxu1 %v2328_v8  ;;  %2116 = vmatprep.subr.bf16.mxu0 %v2329_v10  ;;  %v981_v37 = vrot.slane %v973_v48, 4 }
  0xa0   : > { %v980_v38 = vrot.slane %v971_v27, 4  ;;  %2108 = vmatprep.mubr.msk.bf16.mxu0 %vm396_vm3, %v1865_v26 }
  0xa2   : > { %v1866_v39 = vcombine.low %v980_v38, %v981_v37  ;;  %2053 = vmatpush3.bf16.msra.mxu1 %v2328_v8  ;;  %2117 = vmatpush3.bf16.msra.mxu0 %v2329_v10  ;;  %v371_v49 = vpop.permute.xlu1 %370 }
  0xa3   : > { %v369_v45 = vpop.permute.xlu0 %368  ;;  %2054 = vmatprep.subr.bf16.mxu1 %v2330_v50  ;;  %2118 = vmatprep.subr.bf16.mxu0 %v2331_v17 }
  0xa4   : > { %2044 = vmatprep.mubr.msk.bf16.mxu1 %vm396_vm3, %v369_v45  ;;  %2109 = vmatmul.mubr.msk.bf16.gmra.mrb[4].mxu0 %vm396_vm3, %v1866_v39 }
  0xa5   : > { %2045 = vmatmul.mubr.msk.bf16.gmra.mrb[4].mxu1 %vm396_vm3, %v371_v49  ;;  %2120 = vmatprep.mubr.msk.bf16.mxu0 %vm396_vm3, %v2713_v56  ;;  %v2336_v56 = vld [vmem:[%s3008_s2 + $0x50] sm:$0xff]  }
  0xa6   : > { %2055 = vmatpush3.bf16.msra.mxu1 %v2330_v50  ;;  %2119 = vmatpush3.bf16.msra.mxu0 %v2331_v17 }
  0xa7   : > { %2056 = vmatprep.mubr.msk.bf16.mxu1 %vm396_vm3, %v2578_v24  ;;  %2064 = vmatprep.subr.bf16.mxu1 %v2332_v51  ;;  %v2337_v24 = vld [vmem:[%s3008_s2 + $0xd0] sm:$0xff]  }
  0xa8   : > { %2128 = vmatprep.subr.bf16.mxu0 %v2333_v54 }
  0xac   : > { %2121 = vmatmul.mubr.msk.bf16.vlgmr.msra.gmra.mrb[0].mxu0 %vm396_vm3, %v2723_v35  ;;  %v2338_v35 = vld [vmem:[%s3008_s2 + $0x58] sm:$0xff]  }
  0xad   : > { %2057 = vmatmul.mubr.msk.bf16.vlgmr.msra.gmra.mrb[0].mxu1 %vm396_vm3, %v2574_v23  ;;  %2129 = vmatpush3.bf16.msra.mxu0 %v2333_v54  ;;  %v2339_v23 = vld [vmem:[%s3008_s2 + $0xd8] sm:$0xff]  }
  0xae   : > { %2065 = vmatpush3.bf16.msra.mxu1 %v2332_v51  ;;  %2130 = vmatprep.subr.bf16.mxu0 %v2335_v12 }
  0xaf   : > { %2066 = vmatprep.subr.bf16.mxu1 %v2334_v44  ;;  %2124 = vmatprep.mubr.msk.bf16.mxu0 %vm396_vm3, %v2754_v30  ;;  %v2340_v30 = vld [vmem:[%s3008_s2 + $0x60] sm:$0xff]  }
  0xb0   : > { %2060 = vmatprep.mubr.msk.bf16.mxu1 %vm396_vm3, %v2639_v0  ;;  %v2341_v0 = vld [vmem:[%s3008_s2 + $0xe0] sm:$0xff]  }
  0xb1   : > { %2131 = vmatpush3.bf16.msra.mxu0 %v2335_v12 }
  0xb2   : > { %2067 = vmatpush3.bf16.msra.mxu1 %v2334_v44  ;;  %2132 = vmatprep.subr.bf16.mxu0 %v2337_v24 }
  0xb3   : > { %2068 = vmatprep.subr.bf16.mxu1 %v2336_v56 }
  0xb4   : > { %2125 = vmatmul.mubr.msk.bf16.gmra.mrb[4].mxu0 %vm396_vm3, %v2756_v31  ;;  %v2348_v31 = vld [vmem:[%s3008_s2 + $0x100] sm:$0xff]  }
  0xb5   : > { %2061 = vmatmul.mubr.msk.bf16.gmra.mrb[4].mxu1 %vm396_vm3, %v2647_v1  ;;  %2133 = vmatpush3.bf16.msra.mxu0 %v2337_v24  ;;  %v2343_v1 = vld [vmem:[%s3008_s2 + $0xe8] sm:$0xff]  }
  0xb6   : > { %2069 = vmatpush3.bf16.msra.mxu1 %v2336_v56  ;;  %2134 = vmatprep.subr.bf16.mxu0 %v2339_v23 }
  0xb7   : > { %2070 = vmatprep.subr.bf16.mxu1 %v2338_v35  ;;  %2136 = vmatprep.mubr.msk.bf16.mxu0 %vm396_vm3, %v2667_v20  ;;  %v2342_v20 = vld [vmem:[%s3008_s2 + $0x68] sm:$0xff]  }
  0xb8   : > { %2072 = vmatprep.mubr.msk.bf16.mxu1 %vm396_vm3, %v1823_v4  ;;  %v2347_v4 = vld [vmem:[%s3008_s2 + $0xf8] sm:$0xff]  }
  0xb9   : > { %2135 = vmatpush3.bf16.msra.mxu0 %v2339_v23 }
  0xba   : > { %2071 = vmatpush3.bf16.msra.mxu1 %v2338_v35  ;;  %2144 = vmatprep.subr.bf16.mxu0 %v2341_v0 }
  0xbb   : > { %2080 = vmatprep.subr.bf16.mxu1 %v2340_v30 }
  0xbc   : > { %2137 = vmatmul.mubr.msk.bf16.vlgmr.msra.gmra.mrb[0].mxu0 %vm396_vm3, %v2671_v22  ;;  %v2344_v22 = vld [vmem:[%s3008_s2 + $0x70] sm:$0xff]  }
  0xbd   : > { %2073 = vmatmul.mubr.msk.bf16.vlgmr.msra.gmra.mrb[0].mxu1 %vm396_vm3, %v1824_v11  ;;  %2145 = vmatpush3.bf16.msra.mxu0 %v2341_v0  ;;  %v1384_v11 = vpop.permute.xlu0 %1383 }
  0xbe   : > { %2081 = vmatpush3.bf16.msra.mxu1 %v2340_v30  ;;  %2146 = vmatprep.subr.bf16.mxu0 %v2343_v1 }
  0xbf   : > { %2082 = vmatprep.subr.bf16.mxu1 %v2342_v20  ;;  %2140 = vmatprep.mubr.msk.bf16.mxu0 %vm396_vm3, %v2693_v46  ;;  %v2346_v46 = vld [vmem:[%s3008_s2 + $0x78] sm:$0xff]  }
  0xc0   : > { %2076 = vmatprep.mubr.msk.bf16.mxu1 %vm396_vm3, %v1825_v32 }
  0xc1   : > { %2147 = vmatpush3.bf16.msra.mxu0 %v2343_v1  ;;  %v1388_v32 = vpop.permute.xlu0 %1387 }
  0xc2   : > { %2083 = vmatpush3.bf16.msra.mxu1 %v2342_v20  ;;  %2148 = vmatprep.subr.bf16.mxu0 %v2345_v41 }
  0xc3   : > { %2084 = vmatprep.subr.bf16.mxu1 %v2344_v22 }
  0xc4   : > { %2141 = vmatmul.mubr.msk.bf16.gmra.mrb[4].mxu0 %vm396_vm3, %v2697_v47  ;;  %v1386_v47 = vpop.permute.xlu1 %1385 }
  0xc5   : > { %2077 = vmatmul.mubr.msk.bf16.gmra.mrb[4].mxu1 %vm396_vm3, %v1826_v36  ;;  %2149 = vmatpush3.bf16.msra.mxu0 %v2345_v41  ;;  %v2350_v36 = vld [vmem:[%s3008_s2 + $0x110] sm:$0xff]  }
  0xc6   : > { %2085 = vmatpush3.bf16.msra.mxu1 %v2344_v22  ;;  %2150 = vmatprep.subr.bf16.mxu0 %v2347_v4 }
  0xc7   : > { %2086 = vmatprep.subr.bf16.mxu1 %v2346_v46  ;;  %2152 = vmatprep.mubr.msk.bf16.mxu0 %vm396_vm3, %v1384_v11 }
  0xc8   : > { %2088 = vmatprep.mubr.msk.bf16.mxu1 %vm396_vm3, %v2766_v25  ;;  %v1390_v25 = vpop.permute.xlu1 %1389 }
  0xc9   : > { %2151 = vmatpush3.bf16.msra.mxu0 %v2347_v4 }
  0xca   : > { %2087 = vmatpush3.bf16.msra.mxu1 %v2346_v46  ;;  %2160 = vmatprep.subr.bf16.mxu0 %v2348_v31 }
  0xcb   : > { %2176 = vmatprep.subr.bf16.mxu1 %v2348_v31 }
  0xcc   : > { %2153 = vmatmul.mubr.msk.bf16.vlgmr.msra.gmra.mrb[0].mxu0 %vm396_vm3, %v1386_v47 }
  0xcd   : > { %2089 = vmatmul.mubr.msk.bf16.vlgmr.msra.gmra.mrb[0].mxu1 %vm396_vm3, %v2768_v43  ;;  %2161 = vmatpush3.bf16.msra.mxu0 %v2348_v31  ;;  %v2351_v43 = vld [vmem:[%s3008_s2 + $0x118] sm:$0xff]  }
  0xce   : > { %2180 = vmatpush3.bf16.msra.mxu1 %v2348_v31  ;;  %2162 = vmatprep.subr.bf16.mxu0 %v2349_v19 }
  0xcf   : > { %2177 = vmatprep.subr.bf16.mxu1 %v2349_v19  ;;  %2156 = vmatprep.mubr.msk.bf16.mxu0 %vm396_vm3, %v1388_v32 }
  0xd0   : > { %2092 = vmatprep.mubr.msk.bf16.mxu1 %vm396_vm3, %v2774_v55 }
  0xd1   : > { %2163 = vmatpush3.bf16.msra.mxu0 %v2349_v19 }
  0xd2   : > { %2181 = vmatpush3.bf16.msra.mxu1 %v2349_v19  ;;  %2164 = vmatprep.subr.bf16.mxu0 %v2350_v36 }
  0xd3   : > { %2178 = vmatprep.subr.bf16.mxu1 %v2350_v36 }
  0xd4   : > { %2157 = vmatmul.mubr.msk.bf16.gmra.mrb[4].mxu0 %vm396_vm3, %v1390_v25 }
  0xd5   : > { %2093 = vmatmul.mubr.msk.bf16.gmra.mrb[4].mxu1 %vm396_vm3, %v2776_v5  ;;  %2165 = vmatpush3.bf16.msra.mxu0 %v2350_v36 }
  0xd6   : > { %2182 = vmatpush3.bf16.msra.mxu1 %v2350_v36  ;;  %2166 = vmatprep.subr.bf16.mxu0 %v2351_v43 }
  0xd7   : > { %2179 = vmatprep.subr.bf16.mxu1 %v2351_v43  ;;  %2168 = vmatprep.mubr.msk.bf16.mxu0 %vm396_vm3, %v1939_v6 }
  0xd8   : > { %2172 = vmatprep.mubr.msk.bf16.mxu1 %vm396_vm3, %v1941_v9 }
  0xd9   : > { %2167 = vmatpush3.bf16.msra.mxu0 %v2351_v43 }
  0xda   : > { %2183 = vmatpush3.bf16.msra.mxu1 %v2351_v43 }
  0xdc   : > { %2169 = vmatmul.mubr.msk.bf16.vlgmr.msra.gmra.mrb[0].mxu0 %vm396_vm3, %v1940_v15 }
  0xdd   : > { %2173 = vmatmul.mubr.msk.bf16.vlgmr.msra.gmra.mrb[8].mxu1 %vm396_vm3, %v2752_v29 }
 0x1a0   : > { %v2090_v55 = vpop.f32.mrb[0].mxu1 }
 0x1a1   : > { %v919_v42 = vpop.f32.mrb[1].mxu1 }
 0x1a2   : > { %v2091_v52 = vpop.f32.mrb[2].mxu1 }
 0x1a3   : > { %v922_v5 = vpop.f32.mrb[3].mxu1 }
 0x1a7   : > { %v2158_v6 = vpop.f32.mrb[4].mxu0 }
 0x1a8   : > { %v2094_v13 = vpop.f32.mrb[4].mxu1  ;;  %v1477_v18 = vpop.f32.mrb[5].mxu0 }
 0x1a9   : > { %v2188_v9 = vadd.f32 %v2158_v6, %v2094_v13  ;;  %v935_v57 = vpop.f32.mrb[5].mxu1  ;;  %v2159_v28 = vpop.f32.mrb[6].mxu0 }
 0x1aa   : > { %v2190_v58 = vadd.f32 %v1477_v18, %v935_v57  ;;  %v2095_v21 = vpop.f32.mrb[6].mxu1  ;;  %v1480_v53 = vpop.f32.mrb[7].mxu0 }
 0x1ab   : > { %v2192_v7 = vadd.f32 %v2159_v28, %v2095_v21  ;;  %v938_v15 = vpop.f32.mrb[7].mxu1 }
 0x1ac   : > { %v2194_v59 = vadd.f32 %v1480_v53, %v938_v15 }
 0x1af   : > { %v2170_v29 = vpop.f32.mrb[0].mxu0 }
 0x1b0   : > { %v2184_v33 = vadd.f32 %v2170_v29, %v2090_v55  ;;  %v1598_v60 = vpop.f32.mrb[1].mxu0  ;;  %v2174_v61 = vpop.f32.mrb[8].mxu1 }
 0x1b1   : > { %v2185_v62 = vadd.f32 %v1598_v60, %v919_v42  ;;  %v2189_v40 = vadd.f32 %v2188_v9, %v2174_v61  ;;  %v2171_v63 = vpop.f32.mrb[2].mxu0  ;;  %v1614_v2 = vpop.f32.mrb[9].mxu1 }
 0x1b2   : > { %v1646_v3 = vadd.f32 %v2184_v33, %v1951_v34  ;;  %v2186_v8 = vadd.f32 %v2171_v63, %v2091_v52  ;;  %v2191_v10 = vadd.f32 %v2190_v58, %v1614_v2  ;;  %v1601_v14 = vpop.f32.mrb[3].mxu0  ;;  %v2175_v16 = vpop.f32.mrb[10].mxu1 }
 0x1b3   : > { %v1644_v26 = vadd.f32 %v2185_v62, %v1951_v34  ;;  %v1650_v48 = vadd.f32 %v2189_v40, %v1951_v34  ;;  %v2187_v27 = vadd.f32 %v1601_v14, %v922_v5  ;;  %v2193_v50 = vadd.f32 %v2192_v7, %v2175_v16  ;;  %v1617_v17 = vpop.f32.mrb[11].mxu1 }
 0x1b4   : > { %1654 = vst.msk [vmem:[%s270_s10 + $0x10] sm:$0xff] %vm396_vm3, %v1646_v3  ;;  %v1647_v37 = vadd.f32 %v2186_v8, %v1951_v34  ;;  %v1648_v38 = vadd.f32 %v2191_v10, %v1951_v34  ;;  %v2195_v39 = vadd.f32 %v2194_v59, %v1617_v17 }
 0x1b5   : > { %1652 = vst.msk [vmem:[%s270_s10] sm:$0xff] %vm396_vm3, %v1644_v26  ;;  %1658 = vst.msk [vmem:[%s270_s10 + $0x30] sm:$0xff] %vm396_vm3, %v1650_v48  ;;  %v1645_v45 = vadd.f32 %v2187_v27, %v1951_v34  ;;  %v1651_v49 = vadd.f32 %v2193_v50, %v1951_v34 }
 0x1b6   : > { %1655 = vst.msk [vmem:[%s270_s10 + $0x18] sm:$0xff] %vm396_vm3, %v1647_v37  ;;  %1656 = vst.msk [vmem:[%s270_s10 + $0x20] sm:$0xff] %vm396_vm3, %v1648_v38  ;;  %v1649_v51 = vadd.f32 %v2195_v39, %v1951_v34 }
 0x1b7   : > { %1653 = vst.msk [vmem:[%s270_s10 + $0x8] sm:$0xff] %vm396_vm3, %v1645_v45  ;;  %1659 = vst.msk [vmem:[%s270_s10 + $0x38] sm:$0xff] %vm396_vm3, %v1651_v49 }
 0x1b8   : > { %1657 = vst.msk [vmem:[%s270_s10 + $0x28] sm:$0xff] %vm396_vm3, %v1649_v51 }
 0x1b9   : > { %2365 = shalt.err (!%p2362_p5)
}
 0x1ba   : > { %s2366_s29 = scalar_lea.hbm %s2949_s13, 1024  ;;  %s2370_s6 = scalar_lea.hbm %s3010_s4, 2048 }
 0x1bb   : > { %p2367_p6 = scmp.ne.s32.totalorder %s2949_s13, %s2366_s29  ;;  %p2371_p10 = scmp.lt.u32.totalorder %s2949_s13, %s3010_s4 }
 0x1bc   : > { %p2372_p11 = scmp.lt.u32.totalorder %s2370_s6, %s2366_s29  ;;  %p2374_p13 = scmp.lt.u32.totalorder %s2366_s29, %s2949_s13 }
 0x1bd   : > { %p2368_p7 = pnand %p2367_p6, %p2501_p4 }
 0x1be   : > { %p2373_p12 = por %p2372_p11, %p2371_p10 }
 0x1bf   : > { %p2369_p9 = pneg %p2368_p7 }
 0x1c0   : > { %p2375_p0 = por %p2374_p13, %p2373_p12 }
 0x1c2   : > { %p2376_p1 = pnand %p2375_p0, %p2369_p9 }
 0x1c4   : > { %2379 = shalt.err (!%p2376_p1)
}
 0x1c5   : > { %s2434_s9 = smov 128   ;;  %s2435_s10 = smov 8  }
 0x1c6   : > { %2250 = dma.vmem_to_hbm [thread:$0]  (%p2501_p4), %s2951_s11, 1024, %s2949_s13, %s2960_s14, %s2434_s9, %s2434_s9, %s2435_s10  }
 0x1c7 PF: > { %p2257_p2 = scmp.ge.s32.totalorder %s2430_s20, 2  ;;  %s1691_s18 = sand.u32 1, %s2410_s15  }
 0x1c8   : > { %s1692_s12 = scalar_lea.sflag [#allocation3], %s1691_s18 }
 0x1c9   : > { %p2253_p3 = pnand %p2257_p2, %p2508_p8 }
 0x1cb   : > { %2405 = dma.done.wait (!%p2253_p3), %s1692_s12, 1024  }
 0x1cc   : > { %2407 = vsyncadd (!%p2253_p3), %s1692_s12, 4294966272  ;;  %s17_s20 = sadd.s32 1, %s2430_s20   ;;  %s3015_s15 = smov %s2414_s16 }
 0x1cd   : > { %p14_p5 = scmp.ge.s32.totalorder %s17_s20, 4   ;;  %s3016_s16 = smov %s2418_s17 }
 0x1ce   : > { %s3017_s17 = smov %s2514_s28  ;;  %s3018_s18 = smov %s2426_s19 }
 0x1cf   : > { %s3019_s19 = smov %s3021_s23  ;;  %16 = sbr.rel (!%p14_p5) target bundleno = 4 (0x4), region = 82 }
 0x1d6   :  { %1697 = vsyncpa [#allocation3], 1 }
 0x1d7   :  { %1699 = vsyncpa [#allocation3 + $0x1], 1 }

</bundles_post_ra>
